<compile_context>
chip_gen: v5e
topology: v5e:2x2
jax: 0.10.0
libtpu: 0.0.40
codegen_flags: <defaults>
</compile_context>

<pallas_src>
import jax
import jax.numpy as jnp
from jax import lax
from jax.experimental import pallas as pl
from jax.experimental.pallas import tpu as pltpu


_LANE = 128
_PAD_SENTINEL = 1e12   # padded points are pushed far away; must dwarf real coordinates


def _round_up(x, m):
    return ((x + m - 1) // m) * m


def _chd_kernel(pr_ref, gt_ref,
                ind_p2gt_ref, ind_gt2p_ref, d_p2gt_ref, d_gt2p_ref,
                run_min_ref, run_idx_ref):
    """One grid step = (batch tile b, gt tile n).

    pr_ref : (TB, 8, M)   augmented predicted cloud
    gt_ref : (TB, 8, TN)  augmented GT cloud tile
    outputs (lane-dense, points on the last axis):
      ind_p2gt (TB,1,M) i32 / d_p2gt (TB,1,M) f32   -- written once at the last N tile
      ind_gt2p (TB,1,TN) i32 / d_gt2p (TB,1,TN) f32 -- complete per N tile
    scratch:
      run_min (TB,M,TN) f32 / run_idx (TB,M,TN) i32 -- per-lane running min over N tiles
    """
    n = pl.program_id(1)
    n_last = pl.num_programs(1) - 1

    a = pr_ref[...]
    b = gt_ref[...]
    tb, _, m = a.shape
    tn = b.shape[2]

    # Single MXU matmul (K=8, zero-padded) emits d2 = |x|^2 + |y|^2 - 2 x.y directly.
    d2 = lax.dot_general(a, b, (((1,), (1,)), ((0,), (0,))),
                         preferred_element_type=jnp.float32)           # (TB, M, TN)

    # ---- gt -> pred : min / argmin over M (sublane axis), complete for this N tile ----
    dmin_gt2p = jnp.min(d2, axis=1, keepdims=True)                     # (TB, 1, TN)
    row_idx = lax.broadcasted_iota(jnp.int32, (tb, m, 1), 1)           # small sublane iota
    ind_gt2p = jnp.min(jnp.where(d2 == dmin_gt2p, row_idx, m),
                       axis=1, keepdims=True)                          # (TB, 1, TN)
    d_gt2p_ref[...] = jnp.maximum(dmin_gt2p, 0.0)
    ind_gt2p_ref[...] = ind_gt2p

    # ---- pred -> gt : per-lane running min / global index (pure VPU per tile) ----
    lane_idx = lax.broadcasted_iota(jnp.int32, (tb, 1, tn), 2) + n * tn  # global GT index

    @pl.when(n == 0)
    def _():
        # First tile writes directly (no wasted read-compare-select).
        run_min_ref[...] = d2
        run_idx_ref[...] = jnp.broadcast_to(lane_idx, run_idx_ref.shape)

    @pl.when(n > 0)
    def _():
        cur = run_min_ref[...]
        better = d2 < cur                     # strict '<' keeps the earliest tile on ties
        run_min_ref[...] = jnp.where(better, d2, cur)
        run_idx_ref[...] = jnp.where(better, lane_idx, run_idx_ref[...])

    # Single cross-lane (XLU) reduce + one sublane->lane relayout, only on the last tile.
    @pl.when(n == n_last)
    def _():
        rmin = run_min_ref[...]
        ridx = run_idx_ref[...]
        gmin = jnp.min(rmin, axis=2)                                    # (TB, M)
        big = jnp.iinfo(jnp.int32).max
        gidx = jnp.min(jnp.where(rmin == gmin[:, :, None], ridx, big),
                       axis=2)                                          # (TB, M) valid argmin
        d_p2gt_ref[...] = jnp.maximum(gmin, 0.0)[:, None, :]
        ind_p2gt_ref[...] = gidx[:, None, :]


def chamfer_registration(pc_gt, pc_pred, *, n_tile=None, b_tile=None):
    """Pallas-backed equivalent of distance_matrix + register_dist_based + the
    per-point registered squared distances used by echd.

    Args:
      pc_gt:   (B, N, 3) float32
      pc_pred: (B, M, 3) float32
    Returns:
      inds_p2gt (B, M) int32, inds_gt2p (B, N) int32,
      d_p2gt    (B, M) f32,   d_gt2p    (B, N) f32
    """
    B, N, _ = pc_gt.shape
    B2, M, _ = pc_pred.shape
    assert B == B2

    M_pad = _round_up(M, _LANE)

    # ---- generation-aware VMEM budgets --------------------------------------------------
    try:
        vmem_cap = int(pltpu.get_tpu_info().vmem_capacity_bytes)
    except Exception:  # pragma: no cover - conservative fallback
        vmem_cap = 64 << 20
    if vmem_cap <= (80 << 20):                 # v7x class: 64 MiB VMEM per TensorCore
        d2_budget, vmem_ceiling, n_tile_default = 4 << 20, 48 << 20, 256
    else:                                      # v5e / v6e class: 128 MiB VMEM
        d2_budget, vmem_ceiling, n_tile_default = 12 << 20, 100 << 20, 512

    if n_tile is None:
        n_tile = n_tile_default
        while n_tile > _LANE and M_pad * n_tile * 4 > d2_budget:
            n_tile //= 2
        n_tile = min(n_tile, _round_up(N, _LANE))
    N_pad = _round_up(N, n_tile)

    pr = pc_pred.astype(jnp.float32)
    gt = pc_gt.astype(jnp.float32)
    # Pad point counts with a far-away sentinel so padded points never win the argmin.
    if M_pad != M:
        pr = jnp.concatenate(
            [pr, jnp.full((B, M_pad - M, 3), _PAD_SENTINEL, jnp.float32)], axis=1)
    if N_pad != N:
        gt = jnp.concatenate(
            [gt, jnp.full((B, N_pad - N, 3), _PAD_SENTINEL, jnp.float32)], axis=1)

    if b_tile is None:
        per_b = M_pad * n_tile * 4             # one d2-sized plane per batch element
        cap = max(1, d2_budget // per_b)
        # >= 2 batch grid steps whenever B >= 2 (megacore / dual-TC on v7x).
        b_tile = max(1, min(cap, -(-B // 2)))
    B_pad = _round_up(B, b_tile)
    if B_pad != B:
        pr = jnp.concatenate([pr, jnp.zeros((B_pad - B, M_pad, 3), jnp.float32)], axis=0)
        gt = jnp.concatenate([gt, jnp.zeros((B_pad - B, N_pad, 3), jnp.float32)], axis=0)

    # Lane-dense transposed layouts + MXU K-augmentation, zero-padded to 8 sublanes.
    pr_t = jnp.transpose(pr, (0, 2, 1))                                   # (B, 3, M_pad)
    gt_t = jnp.transpose(gt, (0, 2, 1))                                   # (B, 3, N_pad)
    x2 = jnp.sum(pr_t * pr_t, axis=1, keepdims=True)                      # (B, 1, M_pad)
    y2 = jnp.sum(gt_t * gt_t, axis=1, keepdims=True)                      # (B, 1, N_pad)
    zpr = jnp.zeros((B_pad, 3, M_pad), jnp.float32)
    zgt = jnp.zeros((B_pad, 3, N_pad), jnp.float32)
    pr_aug = jnp.concatenate([pr_t, x2, jnp.ones_like(x2), zpr], axis=1)          # (B,8,M)
    gt_aug = jnp.concatenate([-2.0 * gt_t, jnp.ones_like(y2), y2, zgt], axis=1)   # (B,8,N)

    grid = (B_pad // b_tile, N_pad // n_tile)

    out_shape = (
        jax.ShapeDtypeStruct((B_pad, 1, M_pad), jnp.int32),
        jax.ShapeDtypeStruct((B_pad, 1, N_pad), jnp.int32),
        jax.ShapeDtypeStruct((B_pad, 1, M_pad), jnp.float32),
        jax.ShapeDtypeStruct((B_pad, 1, N_pad), jnp.float32),
    )
    grid_spec = pltpu.PrefetchScalarGridSpec(
        num_scalar_prefetch=0,
        grid=grid,
        in_specs=[
            pl.BlockSpec((b_tile, 8, M_pad), lambda b, n: (b, 0, 0)),   # resident across n
            pl.BlockSpec((b_tile, 8, n_tile), lambda b, n: (b, 0, n)),
        ],
        out_specs=[
            pl.BlockSpec((b_tile, 1, M_pad), lambda b, n: (b, 0, 0)),   # p2gt (final write)
            pl.BlockSpec((b_tile, 1, n_tile), lambda b, n: (b, 0, n)),
            pl.BlockSpec((b_tile, 1, M_pad), lambda b, n: (b, 0, 0)),   # p2gt (final write)
            pl.BlockSpec((b_tile, 1, n_tile), lambda b, n: (b, 0, n)),
        ],
        scratch_shapes=[
            pltpu.VMEM((b_tile, M_pad, n_tile), jnp.float32),   # running per-lane min
            pltpu.VMEM((b_tile, M_pad, n_tile), jnp.int32),     # running global GT index
        ],
    )

    d2_bytes = b_tile * M_pad * n_tile * 4
    step_bytes = (4 * d2_bytes                              # d2 + compare/select temps
                  + 2 * d2_bytes                            # running min / index scratch
                  + 2 * b_tile * 8 * (M_pad + n_tile) * 4   # double-buffered inputs
                  + 2 * b_tile * (M_pad + n_tile) * 8)      # outputs (i32 + f32)
    vmem_limit = int(min(vmem_ceiling, max(32 << 20, step_bytes)))

    flops = 2 * B_pad * M_pad * N_pad * 8 + 6 * B_pad * M_pad * N_pad
    bytes_accessed = 4 * (pr_aug.size + gt_aug.size) + sum(4 * s.size for s in out_shape)
    cost = pl.CostEstimate(flops=flops, transcendentals=0, bytes_accessed=bytes_accessed)

    inds_p2gt, inds_gt2p, d_p2gt, d_gt2p = pl.pallas_call(
        _chd_kernel,
        out_shape=out_shape,
        grid_spec=grid_spec,
        compiler_params=pltpu.CompilerParams(
            dimension_semantics=("parallel", "arbitrary"),
            vmem_limit_bytes=vmem_limit),
        cost_estimate=cost,
    )(pr_aug, gt_aug)

    return (inds_p2gt[:B, 0, :M], inds_gt2p[:B, 0, :N],
            d_p2gt[:B, 0, :M], d_gt2p[:B, 0, :N])


class MultipatchDecoder:
    """JAX/Pallas port of the loss-computing core of the PyTorch MultipatchDecoder.

    forward() raises NotImplementedError in the PyTorch spec too; the effective compute
    path (register_dist_based + echd) is fused into the Pallas kernel above.
    """

    def __init__(self, M, num_patches, alpha_chd=1.0):
        self._num_patches = num_patches
        self._spp = M // num_patches
        self._M = self._spp * num_patches
        self._alpha_chd = alpha_chd
        self.pc_pred = None   # set externally, mimicking the PyTorch module

    def forward(self, *args, **kwargs):
        raise NotImplementedError

    # register_dist_based + echd, fused through the Pallas kernel
    def loss(self, pc_gt):
        inds_p2gt, inds_gt2p, d_p2gt, d_gt2p = chamfer_registration(pc_gt, self.pc_pred)
        # echd: mean_{B,M} ||p - gt[argmin]||^2 + mean_{B,N} ||gt - p[argmin]||^2
        loss_chd = d_p2gt.mean() + d_gt2p.mean()
        return {
            "inds_p2gt": inds_p2gt,
            "inds_gt2p": inds_gt2p,
            "loss_chd": loss_chd,
            "loss_tot": loss_chd * self._alpha_chd,
        }


if __name__ == "__main__":
    key = jax.random.PRNGKey(0)
    B, N = 2, 128
    num_patches = 4
    M = 128  # spp = 32 points per patch

    k1, k2 = jax.random.split(key)
    pc_gt = jax.random.normal(k1, (B, N, 3), dtype=jnp.float32)
    pc_pred = jax.random.normal(k2, (B, M, 3), dtype=jnp.float32)

    model = MultipatchDecoder(M=M, num_patches=num_patches, alpha_chd=1.0)
    model.pc_pred = pc_pred

    losses = model.loss(pc_gt)
    jax.block_until_ready(losses["loss_tot"])

    # Pure-JAX reference (exact broadcast formulation) for a sanity check.
    diff = pc_pred[:, :, None, :] - pc_gt[:, None, :, :]
    d2_ref = jnp.sum(diff * diff, axis=-1)                      # (B, M, N)
    min_p2gt_ref = jnp.min(d2_ref, axis=2)                      # (B, M)
    min_gt2p_ref = jnp.min(d2_ref, axis=1)                      # (B, N)
    chd_ref = min_p2gt_ref.mean() + min_gt2p_ref.mean()

    # Loss check.
    assert abs(float(losses["loss_chd"]) - float(chd_ref)) < 1e-4

    # Index check robust to fp tie-breaks: the distance at the returned index must equal
    # the reference minimum distance.
    g_p2gt = jnp.take_along_axis(d2_ref, losses["inds_p2gt"][:, :, None], axis=2)[..., 0]
    g_gt2p = jnp.take_along_axis(d2_ref, losses["inds_gt2p"][:, None, :], axis=1)[:, 0, :]
    assert float(jnp.max(jnp.abs(g_p2gt - min_p2gt_ref))) < 1e-4
    assert float(jnp.max(jnp.abs(g_gt2p - min_gt2p_ref))) < 1e-4

    print("KERNEL_OK")
</pallas_src>

<mosaic_0001>
module attributes {stable_mosaic.version = 11 : i64} {
  func.func @_chd_kernel(%arg0: i32, %arg1: i32, %arg2: memref<1x8x128xf32, #tpu.memory_space<vmem>>, %arg3: memref<1x8x128xf32, #tpu.memory_space<vmem>>, %arg4: memref<1x1x128xi32, #tpu.memory_space<vmem>>, %arg5: memref<1x1x128xi32, #tpu.memory_space<vmem>>, %arg6: memref<1x1x128xf32, #tpu.memory_space<vmem>>, %arg7: memref<1x1x128xf32, #tpu.memory_space<vmem>>, %arg8: memref<1x128x128xf32, #tpu.memory_space<vmem>>, %arg9: memref<1x128x128xi32, #tpu.memory_space<vmem>>) attributes {dimension_semantics = [#tpu.dimension_semantics<parallel>, #tpu.dimension_semantics<arbitrary>], iteration_bounds = array<i64: 2, 1>, scalar_prefetch = 0 : i64, scratch_operands = 2 : i64, tpu.core_type = #tpu.core_type<tc>, window_params = [{transform_indices = @transform_0, window_bounds = array<i64: 1, 8, 128>}, {transform_indices = @transform_1, window_bounds = array<i64: 1, 8, 128>}, {transform_indices = @transform_2, window_bounds = array<i64: 1, 1, 128>}, {transform_indices = @transform_3, window_bounds = array<i64: 1, 1, 128>}, {transform_indices = @transform_4, window_bounds = array<i64: 1, 1, 128>}, {transform_indices = @transform_5, window_bounds = array<i64: 1, 1, 128>}]} {
    %c0 = arith.constant 0 : index
    %c0_0 = arith.constant 0 : index
    %c0_1 = arith.constant 0 : index
    %0 = vector.load %arg2[%c0, %c0_0, %c0_1] : memref<1x8x128xf32, #tpu.memory_space<vmem>>, vector<1x8x128xf32>
    %c0_2 = arith.constant 0 : index
    %c0_3 = arith.constant 0 : index
    %c0_4 = arith.constant 0 : index
    %1 = vector.load %arg3[%c0_2, %c0_3, %c0_4] : memref<1x8x128xf32, #tpu.memory_space<vmem>>, vector<1x8x128xf32>
    %cst = arith.constant dense<0.000000e+00> : vector<1x128x128xf32>
    %2 = tpu.matmul %0, %1, %cst {dimension_numbers = #tpu.dot_dimension_numbers<[1], [1], [2], [2], [0, 0, 0, 2, 1, 2], [0], [0]>} : vector<1x8x128xf32>, vector<1x8x128xf32>, vector<1x128x128xf32> -> vector<1x128x128xf32>
    %cst_5 = arith.constant dense<0x7F800000> : vector<1x128xf32>
    %3 = vector.multi_reduction <minimumf>, %2, %cst_5 [1] : vector<1x128x128xf32> to vector<1x128xf32>
    %4 = vector.shape_cast %3 : vector<1x128xf32> to vector<1x1x128xf32>
    %5 = tpu.iota {dimensions = array<i32: 1>} : vector<1x128x1xi32>
    %6 = vector.broadcast %4 : vector<1x1x128xf32> to vector<1x128x128xf32>
    %7 = arith.cmpf oeq, %2, %6 : vector<1x128x128xf32>
    %c128_i32 = arith.constant 128 : i32
    %8 = vector.shape_cast %5 : vector<1x128x1xi32> to vector<1x128x1xi32>
    %9 = vector.broadcast %8 : vector<1x128x1xi32> to vector<1x128x128xi32>
    %10 = vector.broadcast %c128_i32 : i32 to vector<1x128x128xi32>
    %11 = arith.select %7, %9, %10 : vector<1x128x128xi1>, vector<1x128x128xi32>
    %cst_6 = arith.constant dense<2147483647> : vector<1x128xi32>
    %12 = vector.multi_reduction <minsi>, %11, %cst_6 [1] : vector<1x128x128xi32> to vector<1x128xi32>
    %13 = vector.shape_cast %12 : vector<1x128xi32> to vector<1x1x128xi32>
    %cst_7 = arith.constant 0.000000e+00 : f32
    %14 = vector.broadcast %cst_7 : f32 to vector<1x1x128xf32>
    %15 = arith.maximumf %4, %14 : vector<1x1x128xf32>
    %c0_8 = arith.constant 0 : index
    %c0_9 = arith.constant 0 : index
    %c0_10 = arith.constant 0 : index
    %16 = vector.load %arg7[%c0_8, %c0_9, %c0_10] : memref<1x1x128xf32, #tpu.memory_space<vmem>>, vector<1x1x128xf32>
    tpu.vector_store %arg7[%c0_8, %c0_9, %c0_10], %15 {strides = array<i32>} : memref<1x1x128xf32, #tpu.memory_space<vmem>>, vector<1x1x128xf32>,
    %c0_11 = arith.constant 0 : index
    %c0_12 = arith.constant 0 : index
    %c0_13 = arith.constant 0 : index
    %17 = vector.load %arg5[%c0_11, %c0_12, %c0_13] : memref<1x1x128xi32, #tpu.memory_space<vmem>>, vector<1x1x128xi32>
    tpu.vector_store %arg5[%c0_11, %c0_12, %c0_13], %13 {strides = array<i32>} : memref<1x1x128xi32, #tpu.memory_space<vmem>>, vector<1x1x128xi32>,
    %18 = tpu.iota {dimensions = array<i32: 2>} : vector<1x1x128xi32>
    %c128_i32_14 = arith.constant 128 : i32
    %19 = arith.muli %arg1, %c128_i32_14 : i32
    %20 = vector.broadcast %19 : i32 to vector<1x1x128xi32>
    %21 = arith.addi %18, %20 : vector<1x1x128xi32>
    %c0_i32 = arith.constant 0 : i32
    %22 = arith.cmpi eq, %arg1, %c0_i32 : i32
    %23 = arith.extui %22 : i1 to i32
    %c0_i32_15 = arith.constant 0 : i32
    %24 = arith.cmpi ne, %23, %c0_i32_15 : i32
    scf.if %24 {
      %c0_20 = arith.constant 0 : index
      %c0_21 = arith.constant 0 : index
      %c0_22 = arith.constant 0 : index
      %31 = vector.load %arg8[%c0_20, %c0_21, %c0_22] : memref<1x128x128xf32, #tpu.memory_space<vmem>>, vector<1x128x128xf32>
      tpu.vector_store %arg8[%c0_20, %c0_21, %c0_22], %2 {strides = array<i32>} : memref<1x128x128xf32, #tpu.memory_space<vmem>>, vector<1x128x128xf32>,
      %32 = vector.shape_cast %21 : vector<1x1x128xi32> to vector<1x1x128xi32>
      %33 = vector.broadcast %32 : vector<1x1x128xi32> to vector<1x128x128xi32>
      %c0_23 = arith.constant 0 : index
      %c0_24 = arith.constant 0 : index
      %c0_25 = arith.constant 0 : index
      %34 = vector.load %arg9[%c0_23, %c0_24, %c0_25] : memref<1x128x128xi32, #tpu.memory_space<vmem>>, vector<1x128x128xi32>
      tpu.vector_store %arg9[%c0_23, %c0_24, %c0_25], %33 {strides = array<i32>} : memref<1x128x128xi32, #tpu.memory_space<vmem>>, vector<1x128x128xi32>,
    } else {
    }
    %c0_i32_16 = arith.constant 0 : i32
    %25 = arith.cmpi sgt, %arg1, %c0_i32_16 : i32
    %26 = arith.extui %25 : i1 to i32
    %c0_i32_17 = arith.constant 0 : i32
    %27 = arith.cmpi ne, %26, %c0_i32_17 : i32
    scf.if %27 {
      %c0_20 = arith.constant 0 : index
      %c0_21 = arith.constant 0 : index
      %c0_22 = arith.constant 0 : index
      %31 = vector.load %arg8[%c0_20, %c0_21, %c0_22] : memref<1x128x128xf32, #tpu.memory_space<vmem>>, vector<1x128x128xf32>
      %32 = arith.cmpf olt, %2, %31 : vector<1x128x128xf32>
      %33 = arith.select %32, %2, %31 : vector<1x128x128xi1>, vector<1x128x128xf32>
      %c0_23 = arith.constant 0 : index
      %c0_24 = arith.constant 0 : index
      %c0_25 = arith.constant 0 : index
      %34 = vector.load %arg8[%c0_23, %c0_24, %c0_25] : memref<1x128x128xf32, #tpu.memory_space<vmem>>, vector<1x128x128xf32>
      tpu.vector_store %arg8[%c0_23, %c0_24, %c0_25], %33 {strides = array<i32>} : memref<1x128x128xf32, #tpu.memory_space<vmem>>, vector<1x128x128xf32>,
      %c0_26 = arith.constant 0 : index
      %c0_27 = arith.constant 0 : index
      %c0_28 = arith.constant 0 : index
      %35 = vector.load %arg9[%c0_26, %c0_27, %c0_28] : memref<1x128x128xi32, #tpu.memory_space<vmem>>, vector<1x128x128xi32>
      %36 = vector.shape_cast %21 : vector<1x1x128xi32> to vector<1x1x128xi32>
      %37 = vector.broadcast %36 : vector<1x1x128xi32> to vector<1x128x128xi32>
      %38 = arith.select %32, %37, %35 : vector<1x128x128xi1>, vector<1x128x128xi32>
      %c0_29 = arith.constant 0 : index
      %c0_30 = arith.constant 0 : index
      %c0_31 = arith.constant 0 : index
      %39 = vector.load %arg9[%c0_29, %c0_30, %c0_31] : memref<1x128x128xi32, #tpu.memory_space<vmem>>, vector<1x128x128xi32>
      tpu.vector_store %arg9[%c0_29, %c0_30, %c0_31], %38 {strides = array<i32>} : memref<1x128x128xi32, #tpu.memory_space<vmem>>, vector<1x128x128xi32>,
    } else {
    }
    %c0_i32_18 = arith.constant 0 : i32
    %28 = arith.cmpi eq, %arg1, %c0_i32_18 : i32
    %29 = arith.extui %28 : i1 to i32
    %c0_i32_19 = arith.constant 0 : i32
    %30 = arith.cmpi ne, %29, %c0_i32_19 : i32
    scf.if %30 {
      %c0_20 = arith.constant 0 : index
      %c0_21 = arith.constant 0 : index
      %c0_22 = arith.constant 0 : index
      %31 = vector.load %arg8[%c0_20, %c0_21, %c0_22] : memref<1x128x128xf32, #tpu.memory_space<vmem>>, vector<1x128x128xf32>
      %c0_23 = arith.constant 0 : index
      %c0_24 = arith.constant 0 : index
      %c0_25 = arith.constant 0 : index
      %32 = vector.load %arg9[%c0_23, %c0_24, %c0_25] : memref<1x128x128xi32, #tpu.memory_space<vmem>>, vector<1x128x128xi32>
      %cst_26 = arith.constant dense<0x7F800000> : vector<1x128xf32>
      %33 = vector.multi_reduction <minimumf>, %31, %cst_26 [2] : vector<1x128x128xf32> to vector<1x128xf32>
      %34 = vector.shape_cast %33 : vector<1x128xf32> to vector<1x128x1xf32>
      %35 = vector.broadcast %34 : vector<1x128x1xf32> to vector<1x128x128xf32>
      %36 = arith.cmpf oeq, %31, %35 : vector<1x128x128xf32>
      %c2147483647_i32 = arith.constant 2147483647 : i32
      %37 = vector.broadcast %c2147483647_i32 : i32 to vector<1x128x128xi32>
      %38 = arith.select %36, %32, %37 : vector<1x128x128xi1>, vector<1x128x128xi32>
      %cst_27 = arith.constant dense<2147483647> : vector<1x128xi32>
      %39 = vector.multi_reduction <minsi>, %38, %cst_27 [2] : vector<1x128x128xi32> to vector<1x128xi32>
      %cst_28 = arith.constant 0.000000e+00 : f32
      %40 = vector.broadcast %cst_28 : f32 to vector<1x128xf32>
      %41 = arith.maximumf %33, %40 : vector<1x128xf32>
      %42 = vector.shape_cast %41 : vector<1x128xf32> to vector<1x1x128xf32>
      %c0_29 = arith.constant 0 : index
      %c0_30 = arith.constant 0 : index
      %c0_31 = arith.constant 0 : index
      %43 = vector.load %arg6[%c0_29, %c0_30, %c0_31] : memref<1x1x128xf32, #tpu.memory_space<vmem>>, vector<1x1x128xf32>
      tpu.vector_store %arg6[%c0_29, %c0_30, %c0_31], %42 {strides = array<i32>} : memref<1x1x128xf32, #tpu.memory_space<vmem>>, vector<1x1x128xf32>,
      %44 = vector.shape_cast %39 : vector<1x128xi32> to vector<1x1x128xi32>
      %c0_32 = arith.constant 0 : index
      %c0_33 = arith.constant 0 : index
      %c0_34 = arith.constant 0 : index
      %45 = vector.load %arg4[%c0_32, %c0_33, %c0_34] : memref<1x1x128xi32, #tpu.memory_space<vmem>>, vector<1x1x128xi32>
      tpu.vector_store %arg4[%c0_32, %c0_33, %c0_34], %44 {strides = array<i32>} : memref<1x1x128xi32, #tpu.memory_space<vmem>>, vector<1x1x128xi32>,
    } else {
    }
    return
  }
  func.func @transform_0(%arg0: i32, %arg1: i32) -> (i32, i32, i32) {
    %c0_i32 = arith.constant 0 : i32
    %c0_i32_0 = arith.constant 0 : i32
    %c0_i32_1 = arith.constant 0 : i32
    return %arg0, %c0_i32, %c0_i32_0 : i32, i32, i32
  }
  func.func @transform_1(%arg0: i32, %arg1: i32) -> (i32, i32, i32) {
    %c0_i32 = arith.constant 0 : i32
    %c0_i32_0 = arith.constant 0 : i32
    return %arg0, %c0_i32, %arg1 : i32, i32, i32
  }
  func.func @transform_2(%arg0: i32, %arg1: i32) -> (i32, i32, i32) {
    %c0_i32 = arith.constant 0 : i32
    %c0_i32_0 = arith.constant 0 : i32
    %c0_i32_1 = arith.constant 0 : i32
    return %arg0, %c0_i32, %c0_i32_0 : i32, i32, i32
  }
  func.func @transform_3(%arg0: i32, %arg1: i32) -> (i32, i32, i32) {
    %c0_i32 = arith.constant 0 : i32
    %c0_i32_0 = arith.constant 0 : i32
    return %arg0, %c0_i32, %arg1 : i32, i32, i32
  }
  func.func @transform_4(%arg0: i32, %arg1: i32) -> (i32, i32, i32) {
    %c0_i32 = arith.constant 0 : i32
    %c0_i32_0 = arith.constant 0 : i32
    %c0_i32_1 = arith.constant 0 : i32
    return %arg0, %c0_i32, %c0_i32_0 : i32, i32, i32
  }
  func.func @transform_5(%arg0: i32, %arg1: i32) -> (i32, i32, i32) {
    %c0_i32 = arith.constant 0 : i32
    %c0_i32_0 = arith.constant 0 : i32
    return %arg0, %c0_i32, %arg1 : i32, i32, i32
  }
}

</mosaic_0001>

<bundles_post_ra>
// kernel: tpu_custom_call.1
= control target key start
LH: loop header
LB: loop body
LE: loop exit
PB: predicated region body
PF: predicated region fallthrough
CT: control target
= control target key end

     0   :  { %11 = vsyncpa [#allocation5], 0  ;;  %s2530_s0 = inlined_call_operand.hbm [shape: f32[2,8,128], index: 0, kind: input, shape index: {}]   ;;  %s2531_s1 = inlined_call_operand.hbm [shape: f32[2,8,128], index: 1, kind: input, shape index: {}]   ;;  %s2532_s2 = inlined_call_operand.hbm [shape: s32[2,1,128], index: 2, kind: output, shape index: {0}]   ;;  %s2533_s3 = inlined_call_operand.hbm [shape: s32[2,1,128], index: 3, kind: output, shape index: {1}]   ;;  %s2534_s4 = inlined_call_operand.hbm [shape: f32[2,1,128], index: 4, kind: output, shape index: {2}]   ;;  %s2535_s5 = inlined_call_operand.hbm [shape: f32[2,1,128], index: 5, kind: output, shape index: {3}]  }
   0x1   :  { %13 = vsyncpa [#allocation5 + $0x1], 0 }
   0x2   :  { %14 = vsyncpa [#allocation8], 0 }
   0x3   :  { %16 = vsyncpa [#allocation8 + $0x1], 0 }
   0x4   :  { %17 = vsyncpa [#allocation6], 0 }
   0x5   :  { %19 = vsyncpa [#allocation6 + $0x1], 0 }
   0x6   :  { %20 = vsyncpa [#allocation11], 0 }
   0x7   :  { %22 = vsyncpa [#allocation11 + $0x1], 0 }
   0x8   :  { %23 = vsyncpa [#allocation14], 0 }
   0x9   :  { %25 = vsyncpa [#allocation14 + $0x1], 0  ;;  %s1823_s18 = smov 0   ;;  %s1825_s19 = smov 0  }
   0xa   :  { %s1827_s20 = smov 0   ;;  %s1829_s21 = smov 0  }
   0xb   :  { %s1831_s22 = smov 0   ;;  %s1833_s23 = smov 0  }
   0xc LB: > { %2541 = sst [smem:[#allocation20_spill]] %s1787_s22  ;;  %s1854_s24 = sadd.s32 4294967295, %s1791_s23   ;;  %s1791_s23 = sphi %s1833_s23, %s31_s23   ;;  %s1787_s22 = sphi %s1831_s22, %s2554_s22   ;;  %s1783_s21 = sphi %s1829_s21, %s2553_s21   ;;  %s1779_s20 = sphi %s1827_s20, %s2557_s20   ;;  %s1775_s19 = sphi %s1825_s19, %s2556_s19   ;;  %s1771_s18 = sphi %s1823_s18, %s2555_s18  }
   0xd   : > { %s2536_s25 = sadd.s32 4294967294, %s1791_s23   ;;  %s43_s26 = sadd.s32 1, %s1787_s22 }
   0xe   : > { %s50_s27 = sadd.s32 1, %s1779_s20  ;;  %p45_p0 = scmp.ge.s32.totalorder %s43_s26, 2 }
   0xf   : > { %p57_p1 = scmp.ne.s32.totalorder %s1779_s20, %s1775_s19  ;;  %p58_p2 = scmp.eq.s32.totalorder %s1791_s23, 0 }
  0x10   : > { %p63_p3 = scmp.ne.s32.totalorder %s1775_s19, %s1771_s18  ;;  %s2559_s26 = smov (%p45_p0, %s43_s26), 0 }
  0x11   : > { %2542 = sst [smem:[#allocation21_spill]] %s2559_s26  ;;  %p1866_p4 = por %p58_p2, %p57_p1 }
  0x12   : > { %p64_p5 = scmp.eq.s32.totalorder %s1854_s24, 0  ;;  %s47_s29 = ssub.s32 %s1787_s22, %s2559_s26 }
  0x13   : > { %p115_p6 = scmp.eq.s32.totalorder %s1854_s24, 1  ;;  %p48_p7 = scmp.eq.s32.totalorder %s47_s29, 0 }
  0x14   : > { %p1874_p8 = por %p64_p5, %p63_p3  ;;  %p121_p10 = scmp.eq.s32.totalorder %s2536_s25, 1 }
  0x15   : > { %p1878_p9 = por %p115_p6, %p57_p1  ;;  %p1441_p12 = scmp.ge.s32.totalorder %s1791_s23, 2 }
  0x16   : > { %s1885_s7 = scalar_select %p48_p7, %s1779_s20, %s50_s27  }
  0x17   : > { %p1887_p11 = por %p121_p10, %p63_p3  ;;  %p1502_p13 = scmp.lt.s32.totalorder %s1791_s23, 2 }
  0x18   : > { %2546 = sst [smem:[#allocation22_spill]] %s1885_s7  ;;  %s223_s9 = sand.u32 1, %s1779_s20  }
  0x19   : > { %s1442_s10 = sshll.u32 %s223_s9, 3  ;;  %s1443_s11 = sshll.u32 %s1787_s22, 3 }
  0x1a   : > { %s231_s14 = scalar_lea.hbm %s2530_s0, %s1443_s11  ;;  %s227_s15 = scalar_lea.vmem [#allocation4], %s1442_s10 }
  0x1b   : > { %s235_s16 = sshll.u32 %s227_s15, 4  ;;  %s233_s17 = sshll.u32 %s231_s14, 4  ;;  %s236_s16 = int_to_ptr.vmem [resolvable:$true] %s235_s16  ;;  %s234_s17 = int_to_ptr.hbm [resolvable:$true] %s233_s17 }
  0x1c   : > { %p1483_p0 = pnand %p1502_p13, %p1866_p4  ;;  %p1446_p1 = scmp.ge.s32.totalorder %s1791_s23, 1 }
  0x1d   : > { %p260_p2 = scmp.lt.s32.totalorder %s1791_s23, 3  ;;  %s224_s27 = scalar_lea.sflag [#allocation5], %s223_s9 }
  0x1e   : > { %1485 = dma.hbm_to_vmem [thread:$0]  (!%p1483_p0), %s234_s17, 128, %s236_s16, %s224_s27  }
  0x1f   : > { %p261_p3 = pnand %p1446_p1, %p260_p2  ;;  %s251_s26 = scalar_lea.hbm %s2531_s1, %s1443_s11 }
  0x20   : > { %s246_s22 = scalar_lea.vmem [#allocation7], %s1442_s10  ;;  %s253_s12 = sshll.u32 %s251_s26, 4  ;;  %s254_s12 = int_to_ptr.hbm [resolvable:$true] %s253_s12 }
  0x21   : > { %s255_s7 = sshll.u32 %s246_s22, 4  ;;  %s243_s13 = scalar_lea.sflag [#allocation8], %s223_s9  ;;  %s256_s7 = int_to_ptr.vmem [resolvable:$true] %s255_s7 }
  0x22   : > { %1488 = dma.hbm_to_vmem [thread:$0]  (!%p1483_p0), %s254_s12, 128, %s256_s7, %s243_s13  }
  0x23   : > { %264 = sbr.rel (%p261_p3) target bundleno = 827 (0x33b), region = 28  ;;  %s1906_s28 = sand.u32 (!%p261_p3), 1, %s1775_s19  }
  0x24   : > { %s1447_s14 = sshll.u32 (!%p261_p3), %s1906_s28, 3  ;;  %s267_s15 = scalar_lea.sflag (!%p261_p3), [#allocation5], %s1906_s28 }
  0x25   : > { %s270_s16 = scalar_lea.vmem (!%p261_p3), [#allocation4], %s1447_s14 }
  0x28   : > { %1750 = dma.done.wait (%p1874_p8), %s267_s15, 128  }
  0x29   : > { %1752 = vsyncadd (%p1874_p8), %s267_s15, 4294967168  ;;  %s277_s22 = scalar_lea.sflag [#allocation8], %s1906_s28  ;;  %s280_s25 = scalar_lea.vmem [#allocation7], %s1447_s14 }
  0x2a   : > { %1754 = dma.done.wait (%p1874_p8), %s277_s22, 128  }
  0x2b   : > { %1756 = vsyncadd (%p1874_p8), %s277_s22, 4294967168  ;;  %v324_v0 = vld [vmem:[%s270_s16] sm:$0xff]  ;;  %v325_v1 = vld [vmem:[%s280_s25] sm:$0xff]  ;;  %vm358_vm0 = vcmask 64512   ;;  %v493_v32 = vlaneseq  ;;  %vm2540_vm3 = vcmask 130112   ;;  %vm2539_vm5 = vcmask 195712   ;;  %s1226_s17 = scalar_lea.hbm %s2533_s3, %s1783_s21 }
  0x2c   : > { %326 = vxpose.xlu0.b32.start.end [1/1] (short) %v324_v0, 128  ;;  %422 = vmatpush.msra.mxu0 %v325_v1  ;;  %vm1107_vm15 = vcmask 261312   ;;  %s323_s26 = scalar_lea.vmem [#allocation13], %s1906_s28  ;;  %s311_s30 = scalar_lea.vmem [#allocation10], %s1906_s28 }
  0x2d   : > { %1467 = vmatpush.msra.mxu1 %v325_v1  ;;  %1468 = vmatpush.msra.mxu2 %v325_v1  ;;  %v1977_v33 = vand.u32 127, %v493_v32  ;;  %s317_s7 = scalar_lea.vmem [#allocation12], %s1906_s28  ;;  %s1195_s9 = sand.u32 1, %s1854_s24  }
  0x2e   : > { %1469 = vmatpush.msra.mxu3 %v325_v1  ;;  %s1228_s27 = sshll.u32 %s311_s30, 4  ;;  %s1230_s29 = sshll.u32 %s1226_s17, 4  ;;  %s1229_s27 = int_to_ptr.vmem [resolvable:$true] %s1228_s27  ;;  %s1231_s29 = int_to_ptr.hbm [resolvable:$true] %s1230_s29 }
  0x2f   : > { %v1997_v44 = vadd.s32 4294967288, %v1977_v33  ;;  %v2021_v0 = vadd.s32 4294967280, %v1977_v33  ;;  %s2391_s12 = scalar_lea.sflag [#allocation11], %s1195_s9  ;;  %s1627_s13 = sshra.s32 %s1231_s29, 4  ;;  %s1628_s13 = int_to_ptr.hbm [resolvable:$true] %s1627_s13 }
  0x30   : > { %s1629_s14 = scalar_lea.hbm %s1628_s13, 1  ;;  %s1633_s16 = scalar_lea.hbm %s2533_s3, 2 }
  0x31   : > { %p1630_p4 = scmp.ne.s32.totalorder %s1628_s13, %s1629_s14  ;;  %p1634_p7 = scmp.lt.s32.totalorder %s1628_s13, %s2533_s3 }
  0x32   : > { %p1635_p8 = scmp.lt.s32.totalorder %s1633_s16, %s1629_s14 }
  0x33   : > { %p1631_p5 = pnand %p1630_p4, %p1878_p9 }
  0x34   : > { %p1636_p10 = por %p1635_p8, %p1634_p7 }
  0x35   : > { %p1632_p6 = pneg %p1631_p5 }
  0x37   : > { %p1637_p13 = pnand %p1636_p10, %p1632_p6 }
  0xd0   : > { %v342_v2 = vpop.trf.xlu0 }
  0xd1   : > { %1449 = vmatmul.msk.f32.vlgmr.msra.gmra.mxu0 %vm358_vm0, %v342_v2 }
  0xd8   : > { %v343_v3 = vpop.trf.xlu0 }
  0xd9   : > { %1450 = vmatmul.msk.f32.gmra.mxu0 %vm358_vm0, %v343_v3 }
  0xe0   : > { %v344_v4 = vpop.trf.xlu0 }
  0xe1   : > { %1451 = vmatmul.msk.f32.gmra.mxu0 %vm358_vm0, %v344_v4 }
  0xe8   : > { %v345_v5 = vpop.trf.xlu0 }
  0xe9   : > { %1452 = vmatmul.msk.f32.gmra.mxu0 %vm358_vm0, %v345_v5  ;;  %v494_v5 = vshrl.u32 %v493_v32, 7 }
  0xeb   : > { %v499_v32 = vadd.s32 40, %v494_v5 }
  0xf0   : > { %v346_v6 = vpop.trf.xlu0 }
  0xf1   : > { %1453 = vmatmul.msk.f32.vlgmr.msra.gmra.mxu1 %vm358_vm0, %v346_v6 }
  0xf8   : > { %v347_v7 = vpop.trf.xlu0 }
  0xf9   : > { %1454 = vmatmul.msk.f32.gmra.mxu1 %vm358_vm0, %v347_v7 }
 0x100   : > { %v348_v8 = vpop.trf.xlu0 }
 0x101   : > { %1455 = vmatmul.msk.f32.gmra.mxu1 %vm358_vm0, %v348_v8 }
 0x108   : > { %v349_v9 = vpop.trf.xlu0 }
 0x109   : > { %1456 = vmatmul.msk.f32.gmra.mxu1 %vm358_vm0, %v349_v9 }
 0x110   : > { %v350_v10 = vpop.trf.xlu0 }
 0x111   : > { %1457 = vmatmul.msk.f32.vlgmr.msra.gmra.mxu2 %vm358_vm0, %v350_v10 }
 0x118   : > { %v351_v11 = vpop.trf.xlu0 }
 0x119   : > { %1458 = vmatmul.msk.f32.gmra.mxu2 %vm358_vm0, %v351_v11 }
 0x120   : > { %v352_v12 = vpop.trf.xlu0 }
 0x121   : > { %1459 = vmatmul.msk.f32.gmra.mxu2 %vm358_vm0, %v352_v12 }
 0x128   : > { %v353_v13 = vpop.trf.xlu0 }
 0x129   : > { %1460 = vmatmul.msk.f32.gmra.mxu2 %vm358_vm0, %v353_v13  ;;  %v495_v13 = vadd.s32 8, %v494_v5 }
 0x130   : > { %v354_v14 = vpop.trf.xlu0 }
 0x131   : > { %1461 = vmatmul.msk.f32.vlgmr.msra.gmra.mxu3 %vm358_vm0, %v354_v14  ;;  %v496_v14 = vadd.s32 16, %v494_v5 }
 0x138   : > { %v355_v15 = vpop.trf.xlu0 }
 0x139   : > { %1462 = vmatmul.msk.f32.gmra.mxu3 %vm358_vm0, %v355_v15 }
 0x140   : > { %v356_v16 = vpop.trf.xlu0 }
 0x141   : > { %1463 = vmatmul.msk.f32.gmra.mxu3 %vm358_vm0, %v356_v16  ;;  %v497_v16 = vadd.s32 24, %v494_v5 }
 0x148   : > { %v357_v17 = vpop.trf.xlu0 }
 0x149   : > { %1464 = vmatmul.msk.f32.gmra.mxu3 %vm358_vm0, %v357_v17  ;;  %v498_v17 = vadd.s32 32, %v494_v5 }
 0x14e   : > { %v1935_v18 = vpop.f32.mrf.mxu0 }
 0x14f   : > { %776 = vmin.xlane.f32.xlu0 %v1935_v18 }
 0x156   : > { %v1938_v19 = vpop.f32.mrf.mxu0 }
 0x157   : > { %778 = vmin.xlane.f32.xlu1 %v1938_v19 }
 0x15e   : > { %v1941_v20 = vpop.f32.mrf.mxu0 }
 0x15f   : > { %780 = vmin.xlane.f32.xlu1 %v1941_v20 }
 0x166   : > { %v1944_v21 = vpop.f32.mrf.mxu0 }
 0x167   : > { %782 = vmin.xlane.f32.xlu2 %v1944_v21 }
 0x16e   : > { %v1947_v22 = vpop.f32.mrf.mxu1 }
 0x16f   : > { %784 = vmin.xlane.f32.xlu2 %v1947_v22  ;;  %v472_v39 = vmin.f32 %v1935_v18, %v1947_v22 }
 0x176   : > { %v1950_v23 = vpop.f32.mrf.mxu1 }
 0x177   : > { %786 = vmin.xlane.f32.xlu1 %v1950_v23  ;;  %v473_v37 = vmin.f32 %v1938_v19, %v1950_v23 }
 0x17e   : > { %v1953_v24 = vpop.f32.mrf.mxu1 }
 0x17f   : > { %788 = vmin.xlane.f32.xlu2 %v1953_v24  ;;  %v474_v40 = vmin.f32 %v1941_v20, %v1953_v24 }
 0x186   : > { %v1956_v25 = vpop.f32.mrf.mxu1 }
 0x187   : > { %790 = vmin.xlane.f32.xlu1 %v1956_v25  ;;  %v475_v41 = vmin.f32 %v1944_v21, %v1956_v25 }
 0x194   : > { %v1959_v26 = vpop.f32.mrf.mxu2 }
 0x195   : > { %792 = vmin.xlane.f32.xlu2 %v1959_v26  ;;  %v476_v45 = vmin.f32 %v472_v39, %v1959_v26  ;;  %v2039_v39 = vadd.s32 4294967272, %v1977_v33 }
 0x19c   : > { %v1962_v27 = vpop.f32.mrf.mxu2 }
 0x19d   : > { %794 = vmin.xlane.f32.xlu1 %v1962_v27  ;;  %v477_v43 = vmin.f32 %v473_v37, %v1962_v27  ;;  %v501_v37 = vadd.s32 56, %v494_v5 }
 0x1a4   : > { %v1965_v28 = vpop.f32.mrf.mxu2 }
 0x1a5   : > { %796 = vmin.xlane.f32.xlu2 %v1965_v28  ;;  %v478_v46 = vmin.f32 %v474_v40, %v1965_v28 }
 0x1ac   : > { %v1968_v29 = vpop.f32.mrf.mxu2 }
 0x1ad   : > { %798 = vmin.xlane.f32.xlu1 %v1968_v29  ;;  %v479_v47 = vmin.f32 %v475_v41, %v1968_v29 }
 0x1b4   : > { %v1971_v30 = vpop.f32.mrf.mxu3 }
 0x1b5   : > { %800 = vmin.xlane.f32.xlu2 %v1971_v30  ;;  %v480_v52 = vmin.f32 %v476_v45, %v1971_v30  ;;  %v504_v45 = vadd.s32 80, %v494_v5 }
 0x1bc   : > { %v1974_v31 = vpop.f32.mrf.mxu3 }
 0x1bd   : > { %802 = vmin.xlane.f32.xlu1 %v1974_v31  ;;  %v481_v49 = vmin.f32 %v477_v43, %v1974_v31 }
 0x1bf   : > { %v484_v59 = vmin.f32 %v480_v52, %v481_v49  ;;  %v508_v52 = vadd.s32 112, %v494_v5 }
 0x1c2   : > { %v777_v34 = vpop.xlane.xlu0 %776 }
 0x1c3   : > { %vm808_vm1 = vcmp.eq.f32.partialorder %v1935_v18, %v777_v34  ;;  %v1064_v42 = vmax.f32 %v777_v34, 0.0  ;;  %v500_v34 = vadd.s32 48, %v494_v5 }
 0x1c4   : > { %v1981_v35 = vsel %vm808_vm1, %v1977_v33, 2147483647  ;;  %v1983_v36 = vpop.f32.mrf.mxu3 }
 0x1c5   : > { %804 = vmin.xlane.f32.xlu2 %v1983_v36  ;;  %v841_v38 = vshra.s32 %v1981_v35, 16  ;;  %v1096_v53 = vperm.slane %v1064_v42, %v1977_v33  ;;  %v482_v56 = vmin.f32 %v478_v46, %v1983_v36  ;;  %v503_v42 = vadd.s32 72, %v494_v5 }
 0x1c6   : > { %v505_v46 = vadd.s32 88, %v494_v5 }
 0x1c7   : > { %v2004_v51 = vcvt.s32.f32 %v841_v38  ;;  %v502_v38 = vadd.s32 64, %v494_v5 }
 0x1ca   : > { %v779_v48 = vpop.xlane.xlu1 %778 }
 0x1cb   : > { %vm809_vm2 = vcmp.eq.f32.partialorder %v1938_v19, %v779_v48  ;;  %v1065_v50 = vmax.f32 %v779_v48, 0.0 }
 0x1cc   : > { %v2009_v54 = vsel %vm809_vm2, %v1977_v33, 2147483647  ;;  %v2011_v55 = vpop.f32.mrf.mxu3 }
 0x1cd   : > { %v1098_v57 = vperm.slane %v1065_v50, %v1997_v44  ;;  %v483_v58 = vmin.f32 %v479_v47, %v2011_v55  ;;  %806 = vmin.xlane.f32.xlu1 %v2011_v55  ;;  %844 = vmin.xlane.f32.xlu2 %v2004_v51  ;;  %v855_v62 = vshra.s32 %v2009_v54, 16  ;;  %v506_v47 = vadd.s32 96, %v494_v5 }
 0x1ce   : > { %v507_v50 = vadd.s32 104, %v494_v5 }
 0x1cf   : > { %v1100_v60 = vsel %vm2540_vm3, %v1098_v57, %v1096_v53  ;;  %v485_v61 = vmin.f32 %v482_v56, %v483_v58  ;;  %v2024_v4 = vcvt.s32.f32 %v855_v62  ;;  %v509_v53 = vadd.s32 120, %v494_v5 }
 0x1d0   : > { %v2052_v58 = vadd.s32 4294967264, %v1977_v33 }
 0x1d1   : > { %v486_v63 = vmin.f32 %v484_v59, %v485_v61  ;;  %v2055_v59 = vadd.s32 4294967256, %v1977_v33 }
 0x1d2   : > { %v781_v1 = vpop.xlane.xlu1 %780 }
 0x1d3   : > { %v487_v2 = vrot.slane %v486_v63, 4  ;;  %vm810_vm4 = vcmp.eq.f32.partialorder %v1941_v20, %v781_v1  ;;  %v1066_v3 = vmax.f32 %v781_v1, 0.0 }
 0x1d4   : > { %v2027_v6 = vsel %vm810_vm4, %v1977_v33, 2147483647 }
 0x1d5   : > { %v488_v7 = vmin.f32 %v486_v63, %v487_v2  ;;  %v1102_v8 = vperm.slane %v1066_v3, %v2021_v0  ;;  %858 = vmin.xlane.f32.xlu1 %v2024_v4  ;;  %v869_v9 = vshra.s32 %v2027_v6, 16 }
 0x1d7   : > { %v489_v10 = vrot.slane %v488_v7, 2  ;;  %v2033_v11 = vsel %vm2539_vm5, %v1102_v8, %v1100_v60  ;;  %v2035_v12 = vcvt.s32.f32 %v869_v9 }
 0x1d9   : > { %v490_v15 = vmin.f32 %v488_v7, %v489_v10  ;;  %872 = vmin.xlane.f32.xlu2 %v2035_v12 }
 0x1da   : > { %v783_v40 = vpop.xlane.xlu2 %782 }
 0x1db   : > { %v491_v41 = vrot.slane %v490_v15, 1  ;;  %vm811_vm6 = vcmp.eq.f32.partialorder %v1944_v21, %v783_v40  ;;  %v1067_v43 = vmax.f32 %v783_v40, 0.0 }
 0x1dc   : > { %v2043_v48 = vsel %vm811_vm6, %v1977_v33, 2147483647 }
 0x1dd   : > { %v2045_v49 = vmin.f32 %v490_v15, %v491_v41  ;;  %v2048_v56 = vperm.slane %v1067_v43, %v2039_v39  ;;  %v883_v57 = vshra.s32 %v2043_v48, 16 }
 0x1df   : > { %vm510_vm7 = vcmp.eq.f32.partialorder %v1935_v18, %v2045_v49  ;;  %vm511_vm8 = vcmp.eq.f32.partialorder %v1938_v19, %v2045_v49  ;;  %vm512_vm9 = vcmp.eq.f32.partialorder %v1941_v20, %v2045_v49  ;;  %vm513_vm10 = vcmp.eq.f32.partialorder %v1944_v21, %v2045_v49 }
 0x1e0   : > { %vm514_vm11 = vcmp.eq.f32.partialorder %v1947_v22, %v2045_v49  ;;  %vm515_vm12 = vcmp.eq.f32.partialorder %v1950_v23, %v2045_v49  ;;  %vm516_vm13 = vcmp.eq.f32.partialorder %v1953_v24, %v2045_v49  ;;  %vm517_vm14 = vcmp.eq.f32.partialorder %v1956_v25, %v2045_v49 }
 0x1e1   : > { %vm519_vm0 = vcmp.eq.f32.partialorder %v1962_v27, %v2045_v49  ;;  %vm520_vm1 = vcmp.eq.f32.partialorder %v1965_v28, %v2045_v49  ;;  %vm521_vm2 = vcmp.eq.f32.partialorder %v1968_v29, %v2045_v49  ;;  %vm522_vm4 = vcmp.eq.f32.partialorder %v1971_v30, %v2045_v49 }
 0x1e2   : > { %vm523_vm6 = vcmp.eq.f32.partialorder %v1974_v31, %v2045_v49  ;;  %vm524_vm5 = vcmp.eq.f32.partialorder %v1983_v36, %v2045_v49  ;;  %vm525_vm3 = vcmp.eq.f32.partialorder %v2011_v55, %v2045_v49  ;;  %v526_v60 = vsel %vm510_vm7, %v494_v5, 128 }
 0x1e3   : > { %v527_v61 = vsel %vm511_vm8, %v495_v13, 128  ;;  %v528_v62 = vsel %vm512_vm9, %v496_v14, 128  ;;  %v529_v63 = vsel %vm513_vm10, %v497_v16, 128  ;;  %v530_v1 = vsel %vm514_vm11, %v498_v17, 128 }
 0x1e4   : > { %v531_v18 = vsel %vm515_vm12, %v499_v32, 128  ;;  %v532_v19 = vsel %vm516_vm13, %v500_v34, 128  ;;  %v533_v20 = vsel %vm517_vm14, %v501_v37, 128  ;;  %vm2548_vm7 = vcmp.eq.f32.partialorder %v1959_v26, %v2045_v49 }
 0x1e5   : > { %v534_v21 = vsel %vm2548_vm7, %v502_v38, 128  ;;  %v535_v2 = vsel %vm519_vm0, %v503_v42, 128  ;;  %v536_v3 = vsel %vm520_vm1, %v504_v45, 128  ;;  %v537_v5 = vsel %vm521_vm2, %v505_v46, 128  ;;  %v785_v38 = vpop.xlane.xlu2 %784 }
 0x1e6   : > { %v538_v7 = vsel %vm522_vm4, %v506_v47, 128  ;;  %v539_v8 = vsel %vm523_vm6, %v507_v50, 128  ;;  %v540_v9 = vsel %vm524_vm5, %v508_v52, 128  ;;  %v541_v10 = vsel %vm525_vm3, %v509_v53, 128 }
 0x1e7   : > { %vm542_vm8 = vcmp.lt.s32.totalorder %v526_v60, %v530_v1  ;;  %vm544_vm9 = vcmp.lt.s32.totalorder %v527_v61, %v531_v18  ;;  %vm546_vm10 = vcmp.lt.s32.totalorder %v528_v62, %v532_v19  ;;  %vm548_vm11 = vcmp.lt.s32.totalorder %v529_v63, %v533_v20 }
 0x1e8   : > { %vm1111_vm12 = vcmask 326912   ;;  %v543_v13 = vsel %vm542_vm8, %v526_v60, %v530_v1  ;;  %v545_v14 = vsel %vm544_vm9, %v527_v61, %v531_v18  ;;  %v547_v15 = vsel %vm546_vm10, %v528_v62, %v532_v19 }
 0x1e9   : > { %v549_v16 = vsel %vm548_vm11, %v529_v63, %v533_v20  ;;  %vm1115_vm13 = vcmask 392512   ;;  %vm550_vm14 = vcmp.lt.s32.totalorder %v543_v13, %v534_v21  ;;  %vm552_vm0 = vcmp.lt.s32.totalorder %v545_v14, %v535_v2 }
 0x1ea   : > { %vm554_vm1 = vcmp.lt.s32.totalorder %v547_v15, %v536_v3  ;;  %vm556_vm2 = vcmp.lt.s32.totalorder %v549_v16, %v537_v5  ;;  %v551_v17 = vsel %vm550_vm14, %v543_v13, %v534_v21  ;;  %v553_v32 = vsel %vm552_vm0, %v545_v14, %v535_v2  ;;  %v787_v45 = vpop.xlane.xlu1 %786 }
 0x1eb   : > { %v555_v34 = vsel %vm554_vm1, %v547_v15, %v536_v3  ;;  %v557_v37 = vsel %vm556_vm2, %v549_v16, %v537_v5  ;;  %vm558_vm3 = vcmp.lt.s32.totalorder %v551_v17, %v538_v7  ;;  %vm560_vm5 = vcmp.lt.s32.totalorder %v553_v32, %v539_v8 }
 0x1ec   : > { %vm562_vm4 = vcmp.lt.s32.totalorder %v555_v34, %v540_v9  ;;  %vm564_vm6 = vcmp.lt.s32.totalorder %v557_v37, %v541_v10  ;;  %v559_v40 = vsel %vm558_vm3, %v551_v17, %v538_v7  ;;  %v561_v41 = vsel %vm560_vm5, %v553_v32, %v539_v8 }
 0x1ed   : > { %v563_v42 = vsel %vm562_vm4, %v555_v34, %v540_v9  ;;  %v565_v43 = vsel %vm564_vm6, %v557_v37, %v541_v10  ;;  %vm566_vm7 = vcmp.lt.s32.totalorder %v559_v40, %v561_v41  ;;  %v1108_v46 = vsel %vm1107_vm15, %v2048_v56, %v2033_v11 }
 0x1ee   : > { %vm568_vm8 = vcmp.lt.s32.totalorder %v563_v42, %v565_v43  ;;  %v2142_v47 = vcvt.s32.f32 %v883_v57  ;;  %v567_v50 = vsel %vm566_vm7, %v559_v40, %v561_v41  ;;  %vm812_vm9 = vcmp.eq.f32.partialorder %v1947_v22, %v785_v38 }
 0x1ef   : > { %v569_v52 = vsel %vm568_vm8, %v563_v42, %v565_v43  ;;  %v1068_v53 = vmax.f32 %v785_v38, 0.0  ;;  %v2147_v60 = vsel %vm812_vm9, %v1977_v33, 2147483647  ;;  %vm813_vm11 = vcmp.eq.f32.partialorder %v1950_v23, %v787_v45 }
 0x1f0   : > { %vm570_vm10 = vcmp.lt.s32.totalorder %v567_v50, %v569_v52  ;;  %886 = vmin.xlane.f32.xlu1 %v2142_v47  ;;  %v1069_v61 = vmax.f32 %v787_v45, 0.0  ;;  %v897_v56 = vshra.s32 %v2147_v60, 16  ;;  %v2153_v57 = vsel %vm813_vm11, %v1977_v33, 2147483647 }
 0x1f1   : > { %v571_v62 = vsel %vm570_vm10, %v567_v50, %v569_v52  ;;  %v1110_v11 = vperm.slane %v1068_v53, %v2052_v58  ;;  %v911_v1 = vshra.s32 %v2153_v57, 16  ;;  %v2161_v23 = vadd.s32 4294967248, %v1977_v33 }
 0x1f2   : > { %v572_v63 = vrot.slane %v571_v62, 4  ;;  %v1114_v22 = vperm.slane %v1069_v61, %v2055_v59  ;;  %v2158_v19 = vcvt.s32.f32 %v897_v56  ;;  %v789_v20 = vpop.xlane.xlu2 %788  ;;  %vm1119_vm1 = vcmask 458112  }
 0x1f3   : > { %v1112_v18 = vsel %vm1111_vm12, %v1110_v11, %v1108_v46  ;;  %v2164_v2 = vcvt.s32.f32 %v911_v1  ;;  %vm814_vm0 = vcmp.eq.f32.partialorder %v1953_v24, %v789_v20  ;;  %v1070_v5 = vmax.f32 %v789_v20, 0.0 }
 0x1f4   : > { %vm573_vm14 = vcmp.lt.s32.totalorder %v571_v62, %v572_v63  ;;  %v1116_v21 = vsel %vm1115_vm13, %v1114_v22, %v1112_v18  ;;  %900 = vmin.xlane.f32.xlu2 %v2158_v19  ;;  %v2169_v3 = vsel %vm814_vm0, %v1977_v33, 2147483647  ;;  %v581_v10 = vmax.f32 %v2045_v49, 0.0 }
 0x1f5   : > { %v925_v7 = vshra.s32 %v2169_v3, 16  ;;  %v1118_v8 = vperm.slane %v1070_v5, %v2161_v23  ;;  %v574_v9 = vsel %vm573_vm14, %v571_v62, %v572_v63  ;;  %v2241_v20 = vadd.s32 4294967240, %v1977_v33 }
 0x1f6   : > { %v575_v14 = vrot.slane %v574_v9, 2  ;;  %582 = vst [vmem:[%s323_s26] sm:$0x1] %v581_v10  ;;  %v2246_v5 = vadd.s32 4294967232, %v1977_v33  ;;  %vm1123_vm11 = vcmask 523712   ;;  %vm1127_vm14 = vcmask 589312  }
 0x1f7   : > { %v2176_v13 = vsel %vm1119_vm1, %v1118_v8, %v1116_v21  ;;  %v2178_v24 = vcvt.s32.f32 %v925_v7  ;;  %v2249_v8 = vadd.s32 4294967224, %v1977_v33 }
 0x1f8   : > { %914 = vmin.xlane.f32.xlu1 %v2164_v2  ;;  %vm576_vm2 = vcmp.lt.s32.totalorder %v574_v9, %v575_v14 }
 0x1f9   : > { %v577_v16 = vsel %vm576_vm2, %v574_v9, %v575_v14  ;;  %vm1131_vm2 = vcmask 654912  }
 0x1fa   : > { %v791_v15 = vpop.xlane.xlu1 %790  ;;  %v578_v17 = vrot.slane %v577_v16, 1 }
 0x1fb   : > { %vm815_vm3 = vcmp.eq.f32.partialorder %v1956_v25, %v791_v15 }
 0x1fc   : > { %928 = vmin.xlane.f32.xlu2 %v2178_v24  ;;  %v2186_v49 = vsel %vm815_vm3, %v1977_v33, 2147483647  ;;  %vm579_vm5 = vcmp.lt.s32.totalorder %v577_v16, %v578_v17  ;;  %vm1135_vm3 = vcmask 720512  }
 0x1fd   : > { %v939_v32 = vshra.s32 %v2186_v49, 16  ;;  %v580_v37 = vsel %vm579_vm5, %v577_v16, %v578_v17  ;;  %v2257_v16 = vadd.s32 4294967208, %v1977_v33  ;;  %vm1139_vm5 = vcmask 786112  }
 0x1fe   : > { %583 = vst [vmem:[%s311_s30] sm:$0x1] %v580_v37  ;;  %v2262_v37 = vadd.s32 4294967200, %v1977_v33 }
 0x1ff   : > { %v2189_v34 = vcvt.s32.f32 %v939_v32 }
 0x201   : > { %942 = vmin.xlane.f32.xlu1 %v2189_v34 }
 0x208   : > { %v793_v38 = vpop.xlane.xlu2 %792 }
 0x209   : > { %vm816_vm4 = vcmp.eq.f32.partialorder %v1959_v26, %v793_v38  ;;  %v1072_v7 = vmax.f32 %v793_v38, 0.0 }
 0x20a   : > { %v2197_v25 = vsel %vm816_vm4, %v1977_v33, 2147483647  ;;  %vm1143_vm4 = vcmask 851712  }
 0x20b   : > { %v953_v40 = vshra.s32 %v2197_v25, 16  ;;  %v1126_v32 = vperm.slane %v1072_v7, %v2246_v5 }
 0x20d   : > { %v2200_v41 = vcvt.s32.f32 %v953_v40 }
 0x20f   : > { %956 = vmin.xlane.f32.xlu2 %v2200_v41 }
 0x210   : > { %v795_v42 = vpop.xlane.xlu1 %794 }
 0x211   : > { %vm817_vm6 = vcmp.eq.f32.partialorder %v1962_v27, %v795_v42  ;;  %v1073_v9 = vmax.f32 %v795_v42, 0.0 }
 0x212   : > { %v2205_v43 = vsel %vm817_vm6, %v1977_v33, 2147483647  ;;  %vm1147_vm6 = vcmask 917312  }
 0x213   : > { %v967_v45 = vshra.s32 %v2205_v43, 16  ;;  %v1130_v42 = vperm.slane %v1073_v9, %v2249_v8 }
 0x215   : > { %v2208_v46 = vcvt.s32.f32 %v967_v45  ;;  %v2269_v45 = vadd.s32 4294967192, %v1977_v33 }
 0x217   : > { %970 = vmin.xlane.f32.xlu1 %v2208_v46 }
 0x218   : > { %v797_v26 = vpop.xlane.xlu2 %796 }
 0x219   : > { %vm818_vm7 = vcmp.eq.f32.partialorder %v1965_v28, %v797_v26  ;;  %v1074_v10 = vmax.f32 %v797_v26, 0.0 }
 0x21a   : > { %v2213_v50 = vsel %vm818_vm7, %v1977_v33, 2147483647  ;;  %vm1151_vm7 = vcmask 982912  }
 0x21b   : > { %v981_v52 = vshra.s32 %v2213_v50, 16 }
 0x21d   : > { %v2216_v53 = vcvt.s32.f32 %v981_v52 }
 0x21f   : > { %984 = vmin.xlane.f32.xlu2 %v2216_v53 }
 0x220   : > { %v799_v27 = vpop.xlane.xlu1 %798 }
 0x221   : > { %vm819_vm8 = vcmp.eq.f32.partialorder %v1968_v29, %v799_v27  ;;  %v1075_v17 = vmax.f32 %v799_v27, 0.0  ;;  %v2274_v27 = vadd.s32 4294967184, %v1977_v33 }
 0x222   : > { %v2221_v61 = vsel %vm819_vm8, %v1977_v33, 2147483647 }
 0x223   : > { %v995_v62 = vshra.s32 %v2221_v61, 16 }
 0x225   : > { %v2224_v11 = vcvt.s32.f32 %v995_v62 }
 0x227   : > { %998 = vmin.xlane.f32.xlu1 %v2224_v11 }
 0x228   : > { %v801_v28 = vpop.xlane.xlu2 %800 }
 0x229   : > { %vm820_vm9 = vcmp.eq.f32.partialorder %v1971_v30, %v801_v28  ;;  %v1071_v30 = vmax.f32 %v791_v15, 0.0  ;;  %v1076_v38 = vmax.f32 %v801_v28, 0.0 }
 0x22a   : > { %v2229_v56 = vsel %vm820_vm9, %v1977_v33, 2147483647  ;;  %vm1155_vm9 = vcmask 1048512  }
 0x22b   : > { %v1009_v63 = vshra.s32 %v2229_v56, 16  ;;  %v1122_v15 = vperm.slane %v1071_v30, %v2241_v20 }
 0x22d   : > { %v2232_v22 = vcvt.s32.f32 %v1009_v63  ;;  %v1124_v28 = vsel %vm1123_vm11, %v1122_v15, %v2176_v13  ;;  %v1138_v63 = vperm.slane %v1075_v17, %v2257_v16  ;;  %v840_v13 = vand.u32 65535, %v1981_v35 }
 0x22e   : > { %v1128_v30 = vsel %vm1127_vm14, %v1126_v32, %v1124_v28 }
 0x22f   : > { %1012 = vmin.xlane.f32.xlu2 %v2232_v22  ;;  %v1132_v7 = vsel %vm1131_vm2, %v1130_v42, %v1128_v30 }
 0x230   : > { %v803_v29 = vpop.xlane.xlu1 %802 }
 0x231   : > { %vm821_vm10 = vcmp.eq.f32.partialorder %v1974_v31, %v803_v29  ;;  %v2253_v31 = vadd.s32 4294967216, %v1977_v33  ;;  %v1077_v26 = vmax.f32 %v803_v29, 0.0  ;;  %v1142_v29 = vperm.slane %v1076_v38, %v2262_v37 }
 0x232   : > { %v2237_v1 = vsel %vm821_vm10, %v1977_v33, 2147483647 }
 0x233   : > { %v1023_v18 = vshra.s32 %v2237_v1, 16  ;;  %v1146_v9 = vperm.slane %v1077_v26, %v2269_v45 }
 0x235   : > { %v2243_v21 = vcvt.s32.f32 %v1023_v18 }
 0x237   : > { %1026 = vmin.xlane.f32.xlu1 %v2243_v21 }
 0x238   : > { %v805_v14 = vpop.xlane.xlu2 %804 }
 0x239   : > { %vm822_vm0 = vcmp.eq.f32.partialorder %v1983_v36, %v805_v14  ;;  %v1134_v36 = vperm.slane %v1074_v10, %v2253_v31  ;;  %v1078_v62 = vmax.f32 %v805_v14, 0.0  ;;  %v2287_v10 = vadd.s32 4294967176, %v1977_v33 }
 0x23a   : > { %v2265_v40 = vsel %vm822_vm0, %v1977_v33, 2147483647 }
 0x23b   : > { %v1037_v52 = vshra.s32 %v2265_v40, 16  ;;  %v1136_v14 = vsel %vm1135_vm3, %v1134_v36, %v1132_v7  ;;  %v1150_v15 = vperm.slane %v1078_v62, %v2274_v27 }
 0x23c   : > { %v1140_v38 = vsel %vm1139_vm5, %v1138_v63, %v1136_v14  ;;  %v842_v63 = vcvt.s32.f32 %v840_v13 }
 0x23d   : > { %v2279_v18 = vcvt.s32.f32 %v1037_v52  ;;  %v1144_v26 = vsel %vm1143_vm4, %v1142_v29, %v1140_v38 }
 0x23e   : > { %v1148_v52 = vsel %vm1147_vm6, %v1146_v9, %v1144_v26  ;;  %v854_v9 = vand.u32 65535, %v2009_v54 }
 0x23f   : > { %1040 = vmin.xlane.f32.xlu2 %v2279_v18  ;;  %v1152_v28 = vsel %vm1151_vm7, %v1150_v15, %v1148_v52  ;;  %v910_v52 = vand.u32 65535, %v2153_v57 }
 0x240   : > { %v807_v17 = vpop.xlane.xlu1 %806  ;;  %v2292_v32 = vpop.xlane.xlu2 %844  ;;  %v856_v14 = vcvt.s32.f32 %v854_v9 }
 0x241   : > { %vm823_vm8 = vcmp.eq.f32.partialorder %v2011_v55, %v807_v17  ;;  %v1079_v42 = vmax.f32 %v807_v17, 0.0  ;;  %vm846_vm10 = vcmp.eq.f32.partialorder %v2004_v51, %v2292_v32  ;;  %v868_v51 = vand.u32 65535, %v2027_v6 }
 0x242   : > { %v2298_v35 = vsel %vm823_vm8, %v1977_v33, 2147483647  ;;  %v847_v29 = vsel %vm846_vm10, %v842_v63, inf }
 0x243   : > { %v1154_v36 = vperm.slane %v1079_v42, %v2287_v10  ;;  %v1051_v62 = vshra.s32 %v2298_v35, 16  ;;  %v870_v15 = vcvt.s32.f32 %v868_v51  ;;  %v882_v42 = vand.u32 65535, %v2043_v48 }
 0x245   : > { %v1156_v55 = vsel %vm1155_vm9, %v1154_v36, %v1152_v28  ;;  %v2307_v30 = vcvt.s32.f32 %v1051_v62  ;;  %v884_v54 = vcvt.s32.f32 %v882_v42  ;;  %v912_v28 = vcvt.s32.f32 %v910_v52 }
 0x246   : > { %1158 = vst [vmem:[%s317_s7] sm:$0x1] %v1156_v55 }
 0x247   : > { %1054 = vmin.xlane.f32.xlu1 %v2307_v30  ;;  %848 = vmin.xlane.f32.xlu2 %v847_v29 }
 0x248   : > { %v2313_v7 = vpop.xlane.xlu1 %858 }
 0x249   : > { %vm860_vm0 = vcmp.eq.f32.partialorder %v2024_v4, %v2313_v7  ;;  %v896_v4 = vand.u32 65535, %v2147_v60 }
 0x24a   : > { %v861_v17 = vsel %vm860_vm0, %v856_v14, inf }
 0x24c   : > { %v2319_v13 = vpop.xlane.xlu2 %872 }
 0x24d   : > { %vm874_vm8 = vcmp.eq.f32.partialorder %v2035_v12, %v2319_v13  ;;  %v898_v12 = vcvt.s32.f32 %v896_v4 }
 0x24e   : > { %v875_v38 = vsel %vm874_vm8, %v870_v15, inf }
 0x24f   : > { %862 = vmin.xlane.f32.xlu1 %v861_v17  ;;  %876 = vmin.xlane.f32.xlu2 %v875_v38 }
 0x263   : > { %v2324_v26 = vpop.xlane.xlu1 %886 }
 0x264   : > { %vm888_vm10 = vcmp.eq.f32.partialorder %v2142_v47, %v2324_v26  ;;  %v924_v47 = vand.u32 65535, %v2169_v3  ;;  %v952_v3 = vand.u32 65535, %v2197_v25  ;;  %v980_v25 = vand.u32 65535, %v2213_v50 }
 0x265   : > { %v889_v6 = vsel %vm888_vm10, %v884_v54, inf  ;;  %v1008_v50 = vand.u32 65535, %v2229_v56 }
 0x266   : > { %890 = vmin.xlane.f32.xlu1 %v889_v6  ;;  %v926_v57 = vcvt.s32.f32 %v924_v47  ;;  %v954_v14 = vcvt.s32.f32 %v952_v3  ;;  %v982_v42 = vcvt.s32.f32 %v980_v25 }
 0x267   : > { %v2330_v36 = vpop.xlane.xlu2 %900  ;;  %v1010_v52 = vcvt.s32.f32 %v1008_v50 }
 0x268   : > { %vm902_vm0 = vcmp.eq.f32.partialorder %v2158_v19, %v2330_v36  ;;  %v938_v19 = vand.u32 65535, %v2186_v49  ;;  %v966_v49 = vand.u32 65535, %v2205_v43  ;;  %v994_v43 = vand.u32 65535, %v2221_v61 }
 0x269   : > { %v903_v62 = vsel %vm902_vm0, %v898_v12, inf  ;;  %v1022_v61 = vand.u32 65535, %v2237_v1  ;;  %v1050_v1 = vand.u32 65535, %v2298_v35 }
 0x26a   : > { %904 = vmin.xlane.f32.xlu2 %v903_v62  ;;  %v940_v9 = vcvt.s32.f32 %v938_v19  ;;  %v968_v17 = vcvt.s32.f32 %v966_v49  ;;  %v996_v4 = vcvt.s32.f32 %v994_v43  ;;  %v1036_v62 = vand.u32 65535, %v2265_v40 }
 0x26b   : > { %v2334_v48 = vpop.xlane.xlu1 %914 }
 0x26c   : > { %vm916_vm8 = vcmp.eq.f32.partialorder %v2164_v2, %v2334_v48  ;;  %v1038_v47 = vcvt.s32.f32 %v1036_v62 }
 0x26d   : > { %v917_v60 = vsel %vm916_vm8, %v912_v28, inf }
 0x26e   : > { %918 = vmin.xlane.f32.xlu1 %v917_v60 }
 0x26f   : > { %v2339_v63 = vpop.xlane.xlu2 %928 }
 0x270   : > { %vm930_vm10 = vcmp.eq.f32.partialorder %v2178_v24, %v2339_v63 }
 0x271   : > { %v931_v55 = vsel %vm930_vm10, %v926_v57, inf }
 0x272   : > { %932 = vmin.xlane.f32.xlu2 %v931_v55 }
 0x274   : > { %v2344_v29 = vpop.xlane.xlu1 %942 }
 0x275   : > { %vm944_vm0 = vcmp.eq.f32.partialorder %v2189_v34, %v2344_v29 }
 0x276   : > { %v945_v2 = vsel %vm944_vm0, %v940_v9, inf }
 0x277   : > { %946 = vmin.xlane.f32.xlu1 %v945_v2 }
 0x282   : > { %v2349_v51 = vpop.xlane.xlu2 %956 }
 0x283   : > { %vm958_vm8 = vcmp.eq.f32.partialorder %v2200_v41, %v2349_v51 }
 0x284   : > { %v959_v24 = vsel %vm958_vm8, %v954_v14, inf }
 0x285   : > { %960 = vmin.xlane.f32.xlu2 %v959_v24 }
 0x28a   : > { %v2354_v15 = vpop.xlane.xlu1 %970 }
 0x28b   : > { %vm972_vm10 = vcmp.eq.f32.partialorder %v2208_v46, %v2354_v15 }
 0x28c   : > { %v973_v34 = vsel %vm972_vm10, %v968_v17, inf }
 0x28d   : > { %974 = vmin.xlane.f32.xlu1 %v973_v34 }
 0x292   : > { %v2359_v38 = vpop.xlane.xlu2 %984 }
 0x293   : > { %vm986_vm0 = vcmp.eq.f32.partialorder %v2216_v53, %v2359_v38 }
 0x294   : > { %v987_v41 = vsel %vm986_vm0, %v982_v42, inf }
 0x295   : > { %988 = vmin.xlane.f32.xlu2 %v987_v41 }
 0x29a   : > { %v2364_v54 = vpop.xlane.xlu1 %998 }
 0x29b   : > { %vm1000_vm8 = vcmp.eq.f32.partialorder %v2224_v11, %v2364_v54  ;;  %v1024_v11 = vcvt.s32.f32 %v1022_v61 }
 0x29c   : > { %v1001_v46 = vsel %vm1000_vm8, %v996_v4, inf }
 0x29d   : > { %1002 = vmin.xlane.f32.xlu1 %v1001_v46 }
 0x2a2   : > { %v2369_v6 = vpop.xlane.xlu2 %1012 }
 0x2a3   : > { %vm1014_vm10 = vcmp.eq.f32.partialorder %v2232_v22, %v2369_v6 }
 0x2a4   : > { %v1015_v53 = vsel %vm1014_vm10, %v1010_v52, inf }
 0x2a5   : > { %1016 = vmin.xlane.f32.xlu2 %v1015_v53 }
 0x2aa   : > { %v2374_v12 = vpop.xlane.xlu1 %1026 }
 0x2ab   : > { %vm1028_vm0 = vcmp.eq.f32.partialorder %v2243_v21, %v2374_v12 }
 0x2ac   : > { %v1029_v56 = vsel %vm1028_vm0, %v1024_v11, inf }
 0x2ad   : > { %1030 = vmin.xlane.f32.xlu1 %v1029_v56 }
 0x2b2   : > { %v2379_v28 = vpop.xlane.xlu2 %1040 }
 0x2b3   : > { %vm1042_vm8 = vcmp.eq.f32.partialorder %v2279_v18, %v2379_v28 }
 0x2b4   : > { %v1043_v22 = vsel %vm1042_vm8, %v1038_v47, inf }
 0x2b5   : > { %1044 = vmin.xlane.f32.xlu2 %v1043_v22 }
 0x2b6   : > { %1640 = shalt.err (!%p1637_p13)
}
 0x2b7   : > { %1475 = dma.vmem_to_hbm [thread:$0]  (%p1878_p9), %s1229_s27, 16, %s1231_s29, %s2391_s12   ;;  %v1052_v18 = vcvt.s32.f32 %v1050_v1  ;;  %v851_v60 = vcvt.f32.s32 %v2292_v32  ;;  %v865_v57 = vcvt.f32.s32 %v2313_v7  ;;  %v879_v19 = vcvt.f32.s32 %v2319_v13 }
 0x2b8   : > { %s1239_s10 = scalar_lea.hbm %s2534_s4, %s1783_s21  ;;  %s1241_s11 = sshll.u32 %s317_s7, 4  ;;  %s1242_s11 = int_to_ptr.vmem [resolvable:$true] %s1241_s11 }
 0x2b9   : > { %s1243_s17 = sshll.u32 %s1239_s10, 4  ;;  %s1661_s24 = scalar_lea.hbm %s2534_s4, 2  ;;  %s1244_s17 = int_to_ptr.hbm [resolvable:$true] %s1243_s17 }
 0x2ba   : > { %v2404_v21 = vpop.xlane.xlu1 %1054  ;;  %v849_v40 = vpop.xlane.xlu2 %848  ;;  %s1655_s27 = sshra.s32 %s1244_s17, 4  ;;  %s1656_s27 = int_to_ptr.hbm [resolvable:$true] %s1655_s27 }
 0x2bb   : > { %vm1056_vm10 = vcmp.eq.f32.partialorder %v2307_v30, %v2404_v21  ;;  %v850_v55 = vcvt.f32.s32 %v849_v40  ;;  %s1657_s29 = scalar_lea.hbm %s1656_s27, 1  ;;  %p1662_p3 = scmp.lt.s32.totalorder %s1656_s27, %s2534_s4 }
 0x2bc   : > { %v1057_v35 = vsel %vm1056_vm10, %v1052_v18, inf  ;;  %p1658_p0 = scmp.ne.s32.totalorder %s1656_s27, %s1657_s29  ;;  %p1663_p4 = scmp.lt.s32.totalorder %s1661_s24, %s1657_s29 }
 0x2bd   : > { %1058 = vmin.xlane.f32.xlu1 %v1057_v35 }
 0x2be   : > { %p1659_p1 = pnand %p1658_p0, %p1878_p9  ;;  %p1664_p5 = por %p1663_p4, %p1662_p3 }
 0x2c0   : > { %p1660_p2 = pneg %p1659_p1 }
 0x2c2   : > { %p1665_p6 = pnand %p1664_p5, %p1660_p2 }
 0x2c4   : > { %1668 = shalt.err (!%p1665_p6)
}
 0x2c5   : > { %1476 = dma.vmem_to_hbm [thread:$0]  (%p1878_p9), %s1242_s11, 16, %s1244_s17, %s2391_s12   ;;  %v852_v32 = vshll.u32 %v851_v60, 16  ;;  %v866_v30 = vshll.u32 %v865_v57, 16  ;;  %v863_v7 = vpop.xlane.xlu1 %862  ;;  %v877_v13 = vpop.xlane.xlu2 %876  ;;  %v880_v9 = vshll.u32 %v879_v19, 16 }
 0x2c6   : > { %s1253_s25 = scalar_lea.hbm %s2535_s5, %s1783_s21  ;;  %s1255_s30 = sshll.u32 %s323_s26, 4  ;;  %v864_v3 = vcvt.f32.s32 %v863_v7  ;;  %v878_v14 = vcvt.f32.s32 %v877_v13  ;;  %s1256_s30 = int_to_ptr.vmem [resolvable:$true] %s1255_s30 }
 0x2c7   : > { %s1257_s9 = sshll.u32 %s1253_s25, 4  ;;  %v853_v2 = vadd.s32 %v852_v32, %v850_v55  ;;  %s1204_s10 = scalar_lea.sflag [#allocation14], %s1906_s28  ;;  %s1258_s9 = int_to_ptr.hbm [resolvable:$true] %s1257_s9 }
 0x2c8   : > { %s1683_s12 = sshra.s32 %s1258_s9, 4  ;;  %s1689_s27 = scalar_lea.hbm %s2535_s5, 2  ;;  %s1684_s12 = int_to_ptr.hbm [resolvable:$true] %s1683_s12 }
 0x2c9   : > { %s1685_s11 = scalar_lea.hbm %s1684_s12, 1  ;;  %p1690_p13 = scmp.lt.s32.totalorder %s1684_s12, %s2535_s5 }
 0x2ca   : > { %p1686_p7 = scmp.ne.s32.totalorder %s1684_s12, %s1685_s11  ;;  %p1691_p0 = scmp.lt.s32.totalorder %s1689_s27, %s1685_s11 }
 0x2cc   : > { %p1687_p8 = pnand %p1686_p7, %p1878_p9  ;;  %p1692_p1 = por %p1691_p0, %p1690_p13 }
 0x2ce   : > { %p1688_p10 = pneg %p1687_p8 }
 0x2d0   : > { %p1693_p2 = pnand %p1692_p1, %p1688_p10 }
 0x2d2   : > { %1696 = shalt.err (!%p1693_p2)
}
 0x2d3   : > { %1477 = dma.vmem_to_hbm [thread:$0]  (%p1878_p9), %s1256_s30, 16, %s1258_s9, %s1204_s10   ;;  %v867_v24 = vadd.s32 %v866_v30, %v864_v3  ;;  %v881_v49 = vadd.s32 %v880_v9, %v878_v14  ;;  %v1159_v17 = vperm.slane %v853_v2, %v1977_v33  ;;  %vm2549_vm0 = vcmask 130112  }
 0x2d4   : > { %vm2550_vm8 = vcmask 195712   ;;  %v893_v43 = vcvt.f32.s32 %v2324_v26  ;;  %v907_v52 = vcvt.f32.s32 %v2330_v36  ;;  %v921_v61 = vcvt.f32.s32 %v2334_v48  ;;  %s1212_s7 = scalar_lea.hbm %s2532_s2, %s1783_s21  ;;  %s305_s15 = scalar_lea.vmem [#allocation9], %s1906_s28 }
 0x2d5   : > { %v1160_v34 = vperm.slane %v867_v24, %v1997_v44  ;;  %v1162_v25 = vperm.slane %v881_v49, %v2021_v0  ;;  %v935_v26 = vcvt.f32.s32 %v2339_v63  ;;  %v949_v57 = vcvt.f32.s32 %v2344_v29  ;;  %s1214_s16 = sshll.u32 %s305_s15, 4  ;;  %s1216_s22 = sshll.u32 %s1212_s7, 4  ;;  %s1215_s16 = int_to_ptr.vmem [resolvable:$true] %s1214_s16  ;;  %s1217_s22 = int_to_ptr.hbm [resolvable:$true] %s1216_s22 }
 0x2d6   : > { %v894_v46 = vshll.u32 %v893_v43, 16  ;;  %v908_v44 = vshll.u32 %v907_v52, 16  ;;  %v922_v22 = vshll.u32 %v921_v61, 16  ;;  %v963_v2 = vcvt.f32.s32 %v2349_v51  ;;  %s1192_s25 = scalar_lea.sflag [#allocation6], %s1906_s28  ;;  %s1711_s30 = sshra.s32 %s1217_s22, 4  ;;  %s1712_s30 = int_to_ptr.hbm [resolvable:$true] %s1711_s30 }
 0x2d7   : > { %v1161_v42 = vsel %vm2549_vm0, %v1160_v34, %v1159_v17  ;;  %v950_v7 = vshll.u32 %v949_v57, 16  ;;  %v977_v49 = vcvt.f32.s32 %v2354_v15  ;;  %v1005_v15 = vcvt.f32.s32 %v2364_v54  ;;  %s1713_s9 = scalar_lea.hbm %s1712_s30, 1  ;;  %s1717_s12 = scalar_lea.hbm %s2532_s2, 2 }
 0x2d8   : > { %v1163_v41 = vsel %vm2550_vm8, %v1162_v25, %v1161_v42  ;;  %v964_v14 = vshll.u32 %v963_v2, 16  ;;  %v1033_v54 = vcvt.f32.s32 %v2374_v12  ;;  %p1714_p3 = scmp.ne.s32.totalorder %s1712_s30, %s1713_s9  ;;  %p1718_p6 = scmp.lt.s32.totalorder %s1712_s30, %s2532_s2 }
 0x2d9   : > { %v891_v4 = vpop.xlane.xlu1 %890  ;;  %v978_v25 = vshll.u32 %v977_v49, 16  ;;  %p1719_p7 = scmp.lt.s32.totalorder %s1717_s12, %s1713_s9 }
 0x2da   : > { %v892_v50 = vcvt.f32.s32 %v891_v4  ;;  %p1715_p4 = pnand %p1714_p3, %p1878_p9 }
 0x2db   : > { %p1720_p8 = por %p1719_p7, %p1718_p6 }
 0x2dc   : > { %v895_v53 = vadd.s32 %v894_v46, %v892_v50  ;;  %p1716_p5 = pneg %p1715_p4 }
 0x2dd   : > { %v905_v11 = vpop.xlane.xlu2 %904 }
 0x2de   : > { %v1164_v33 = vperm.slane %v895_v53, %v2039_v39  ;;  %v906_v56 = vcvt.f32.s32 %v905_v11  ;;  %v936_v39 = vshll.u32 %v935_v26, 16  ;;  %p1721_p10 = pnand %p1720_p8, %p1716_p5 }
 0x2e0   : > { %v1165_v0 = vsel %vm1107_vm15, %v1164_v33, %v1163_v41  ;;  %v909_v62 = vadd.s32 %v908_v44, %v906_v56  ;;  %v1006_v33 = vshll.u32 %v1005_v15, 16 }
 0x2e1   : > { %v919_v47 = vpop.xlane.xlu1 %918 }
 0x2e2   : > { %v920_v1 = vcvt.f32.s32 %v919_v47  ;;  %v1166_v40 = vperm.slane %v909_v62, %v2052_v58 }
 0x2e4   : > { %v923_v18 = vadd.s32 %v922_v22, %v920_v1  ;;  %v1167_v36 = vsel %vm1111_vm12, %v1166_v40, %v1165_v0  ;;  %v1034_v40 = vshll.u32 %v1033_v54, 16 }
 0x2e5   : > { %v933_v35 = vpop.xlane.xlu2 %932 }
 0x2e6   : > { %v1168_v48 = vperm.slane %v923_v18, %v2055_v59  ;;  %v934_v60 = vcvt.f32.s32 %v933_v35 }
 0x2e8   : > { %v1169_v19 = vsel %vm1115_vm13, %v1168_v48, %v1167_v36  ;;  %v937_v55 = vadd.s32 %v936_v39, %v934_v60 }
 0x2ea   : > { %v1170_v32 = vperm.slane %v937_v55, %v2161_v23  ;;  %v947_v30 = vpop.xlane.xlu1 %946 }
 0x2eb   : > { %v948_v63 = vcvt.f32.s32 %v947_v30 }
 0x2ec   : > { %v1171_v58 = vsel %vm1119_vm1, %v1170_v32, %v1169_v19 }
 0x2ed   : > { %v951_v13 = vadd.s32 %v950_v7, %v948_v63 }
 0x2ef   : > { %v1172_v9 = vperm.slane %v951_v13, %v2241_v20  ;;  %v991_v20 = vcvt.f32.s32 %v2359_v38  ;;  %v1019_v38 = vcvt.f32.s32 %v2369_v6 }
 0x2f1   : > { %v1173_v59 = vsel %vm1123_vm11, %v1172_v9, %v1171_v58  ;;  %v992_v46 = vshll.u32 %v991_v20, 16  ;;  %v1020_v62 = vshll.u32 %v1019_v38, 16 }
 0x2f8   : > { %v961_v3 = vpop.xlane.xlu2 %960 }
 0x2f9   : > { %v962_v29 = vcvt.f32.s32 %v961_v3 }
 0x2fb   : > { %v965_v24 = vadd.s32 %v964_v14, %v962_v29 }
 0x2fd   : > { %v1174_v23 = vperm.slane %v965_v24, %v2246_v5 }
 0x2ff   : > { %v1175_v17 = vsel %vm1127_vm14, %v1174_v23, %v1173_v59 }
 0x300   : > { %v975_v34 = vpop.xlane.xlu1 %974 }
 0x301   : > { %v976_v42 = vcvt.f32.s32 %v975_v34 }
 0x303   : > { %v979_v41 = vadd.s32 %v978_v25, %v976_v42 }
 0x305   : > { %v1176_v43 = vperm.slane %v979_v41, %v2249_v8 }
 0x307   : > { %v1177_v51 = vsel %vm1131_vm2, %v1176_v43, %v1175_v17 }
 0x308   : > { %v989_v4 = vpop.xlane.xlu2 %988 }
 0x309   : > { %v990_v50 = vcvt.f32.s32 %v989_v4 }
 0x30b   : > { %v993_v52 = vadd.s32 %v992_v46, %v990_v50 }
 0x30d   : > { %v1178_v5 = vperm.slane %v993_v52, %v2253_v31 }
 0x30f   : > { %v1179_v53 = vsel %vm1135_vm3, %v1178_v5, %v1177_v51 }
 0x310   : > { %v1003_v61 = vpop.xlane.xlu1 %1002 }
 0x311   : > { %v1004_v11 = vcvt.f32.s32 %v1003_v61 }
 0x313   : > { %v1007_v44 = vadd.s32 %v1006_v33, %v1004_v11 }
 0x315   : > { %v1180_v8 = vperm.slane %v1007_v44, %v2257_v16  ;;  %v1047_v16 = vcvt.f32.s32 %v2379_v28 }
 0x317   : > { %v1181_v56 = vsel %vm1139_vm5, %v1180_v8, %v1179_v53  ;;  %v1048_v39 = vshll.u32 %v1047_v16, 16 }
 0x318   : > { %v1017_v0 = vpop.xlane.xlu2 %1016 }
 0x319   : > { %v1018_v47 = vcvt.f32.s32 %v1017_v0 }
 0x31b   : > { %v1021_v22 = vadd.s32 %v1020_v62, %v1018_v47 }
 0x31d   : > { %v1182_v31 = vperm.slane %v1021_v22, %v2262_v37  ;;  %v1061_v37 = vcvt.f32.s32 %v2404_v21 }
 0x31f   : > { %v1183_v1 = vsel %vm1143_vm4, %v1182_v31, %v1181_v56  ;;  %v1062_v28 = vshll.u32 %v1061_v37, 16 }
 0x320   : > { %v1031_v26 = vpop.xlane.xlu1 %1030 }
 0x321   : > { %v1032_v18 = vcvt.f32.s32 %v1031_v26 }
 0x323   : > { %v1035_v36 = vadd.s32 %v1034_v40, %v1032_v18 }
 0x325   : > { %v1184_v6 = vperm.slane %v1035_v36, %v2269_v45 }
 0x327   : > { %v1185_v48 = vsel %vm1147_vm6, %v1184_v6, %v1183_v1 }
 0x328   : > { %v1045_v35 = vpop.xlane.xlu2 %1044 }
 0x329   : > { %v1046_v60 = vcvt.f32.s32 %v1045_v35 }
 0x32b   : > { %v1049_v12 = vadd.s32 %v1048_v39, %v1046_v60 }
 0x32d   : > { %v1186_v57 = vperm.slane %v1049_v12, %v2274_v27 }
 0x32f   : > { %v1187_v19 = vsel %vm1151_vm7, %v1186_v57, %v1185_v48 }
 0x330   : > { %v1059_v55 = vpop.xlane.xlu1 %1058 }
 0x331   : > { %v1060_v45 = vcvt.f32.s32 %v1059_v55 }
 0x333   : > { %v1063_v32 = vadd.s32 %v1062_v28, %v1060_v45 }
 0x335   : > { %v1188_v30 = vperm.slane %v1063_v32, %v2287_v10 }
 0x337   : > { %v1189_v27 = vsel %vm1155_vm9, %v1188_v30, %v1187_v19 }
 0x338   : > { %1190 = vst [vmem:[%s305_s15] sm:$0x1] %v1189_v27 }
 0x339   : > { %1724 = shalt.err (!%p1721_p10)
}
 0x33a   : > { %1474 = dma.vmem_to_hbm [thread:$0]  (%p1878_p9), %s1215_s16, 16, %s1217_s22, %s1192_s25  }
 0x33b PF: > { %s1269_s28 = sand.u32 1, %s1771_s18   ;;  %p1490_p13 = pnand %p1441_p12, %p1887_p11 }
 0x33c   : > { %s1270_s17 = scalar_lea.sflag [#allocation6], %s1269_s28 }
 0x33d   : > { %p1491_p0 = pneg %p1490_p13 }
 0x33f   : > { %1758 = dma.done.wait (%p1491_p0), %s1270_s17, 16  }
 0x340   : > { %1760 = vsyncadd (%p1491_p0), %s1270_s17, 4294967280  ;;  %s2551_s27 = sadd.s32 4294967294, %s1791_s23  }
 0x341   : > { %s1278_s29 = sand.u32 1, %s2551_s27  }
 0x342   : > { %s1279_s13 = scalar_lea.sflag [#allocation11], %s1278_s29 }
 0x343   : > { %1762 = dma.done.wait (%p1491_p0), %s1279_s13, 32  }
 0x344   : > { %1764 = vsyncadd (%p1491_p0), %s1279_s13, 4294967264  ;;  %s1297_s6 = scalar_lea.sflag [#allocation14], %s1269_s28 }
 0x345   : > { %1766 = dma.done.wait (%p1491_p0), %s1297_s6, 16  }
 0x346   : > { %1768 = vsyncadd (%p1491_p0), %s1297_s6, 4294967280  ;;  %s31_s23 = sadd.s32 1, %s1791_s23   ;;  %s2552_s8 = sld [smem:[#allocation22_spill]] }
 0x347   : > { %p28_p9 = scmp.ge.s32.totalorder %s31_s23, 4   ;;  %s2553_s21 = sld [smem:[#allocation20_spill]] }
 0x348   : > { %s2554_s22 = sld [smem:[#allocation21_spill]]  ;;  %s2555_s18 = smov %s1775_s19 }
 0x349   : > { %s2556_s19 = smov %s1779_s20  ;;  %30 = sbr.rel (!%p28_p9) target bundleno = 12 (0xc), region = 147 }
 0x34c   : > { %s2557_s20 = smov %s2552_s8 }
 0x34e   :  { %1302 = vsyncpa [#allocation5], 1 }
 0x34f   :  { %1304 = vsyncpa [#allocation5 + $0x1], 1 }
 0x350   :  { %1305 = vsyncpa [#allocation8], 1 }
 0x351   :  { %1307 = vsyncpa [#allocation8 + $0x1], 1 }
 0x352   :  { %1308 = vsyncpa [#allocation6], 1 }
 0x353   :  { %1310 = vsyncpa [#allocation6 + $0x1], 1 }
 0x354   :  { %1311 = vsyncpa [#allocation11], 1 }
 0x355   :  { %1313 = vsyncpa [#allocation11 + $0x1], 1 }
 0x356   :  { %1314 = vsyncpa [#allocation14], 1 }
 0x357   :  { %1316 = vsyncpa [#allocation14 + $0x1], 1 }

</bundles_post_ra>
